<compile_context>
chip_gen: v6e
topology: v6e:2x2x1
jax: 0.10.0
libtpu: 0.0.40
codegen_flags: <defaults>
</compile_context>

<pallas_src>
import functools

import jax
import jax.numpy as jnp
from jax.experimental import pallas as pl
from jax.experimental.pallas import tpu as pltpu

NUM_EMBEDDINGS = 500
EMBED_DIM = 32
SEQ_LEN = 50                         # 50 * 32 = 1600 == linear1 in_features
IN_FEATURES = SEQ_LEN * EMBED_DIM    # 1600
HIDDEN = 256
NUM_CLASSES = 10
CLASSES_PAD = 128                    # lane-dense (multiple-of-128) output width
NEG_BIG = -1e30                      # bias for padded logit columns (exp() == 0)


def _cdiv(a, b):
    return (a + b - 1) // b


def _round_up(x, m):
    return (x + m - 1) // m * m


def _mlp_softmax_kernel(x_ref, w1_ref, b1_ref, w2_ref, b2_ref, o_ref):
    # x_ref:  [TB, 1600] bf16   (flattened-embedding batch tile)
    # w1_ref: [1600, 256] bf16  b1_ref: [1, 256] f32
    # w2_ref: [256, 128]  bf16  b2_ref: [1, 128] f32  (padded cols: zero w, -1e30 bias)
    # o_ref:  [TB, 128]   bf16
    x = x_ref[...]

    # Linear1 (MXU, f32 accumulation) + bias + ReLU.
    h = jnp.dot(x, w1_ref[...], preferred_element_type=jnp.float32) + b1_ref[...]
    h = jnp.maximum(h, 0.0)

    # Linear2, padded to 128 output lanes.  Padded columns have zero weights and a
    # -1e30 bias, so exp(logit - m) underflows to exactly 0 for them: no softmax
    # mass leaks into the denominator.  (Relies on real logits being >> -1e30.)
    logits = jnp.dot(h.astype(jnp.bfloat16), w2_ref[...],
                     preferred_element_type=jnp.float32) + b2_ref[...]

    # Softmax over last dim (== torch.nn.Softmax()'s implicit dim=1 for 2-D input).
    m = jnp.max(logits, axis=-1, keepdims=True)
    e = jnp.exp(logits - m)
    s = jnp.sum(e, axis=-1, keepdims=True)
    o_ref[...] = (e * pl.reciprocal(s, approx=True)).astype(o_ref.dtype)


def _choose_batch_tile(batch, batch_tile):
    """Batch tile so that every block is aligned and the grid has >= 2 even steps."""
    if batch <= 16:
        # Single full-extent block (block shape == padded array shape, always legal).
        return max(8, _round_up(batch, 8))
    n_steps = max(2, _cdiv(batch, batch_tile))
    n_steps += n_steps % 2            # even step count -> balanced v7x megacore split
    # Multiple of 16 keeps bf16 sublane packing happy for partial-array blocks.
    return _round_up(_cdiv(batch, n_steps), 16)


@functools.partial(jax.jit, static_argnames=("batch_tile",))
def employment_forward(tokens, emb_table, w1, b1, w2, b2, *, batch_tile=1024):
    """tokens: int32 [B, SEQ_LEN]; returns float32 [B, NUM_CLASSES]."""
    B = tokens.shape[0]

    # ---- Embedding lookup (gather) + flatten: XLA glue (see header for why the
    #      gather is not fused into the kernel).  bf16 halves the activation
    #      round-trip.  Row-major reshape matches torch.nn.Flatten on [B, L, D].
    #      Dropout1 / Dropout2 are identity (eval mode).
    embedded = jnp.take(emb_table.astype(jnp.bfloat16), tokens, axis=0)   # [B, L, D]
    x_flat = embedded.reshape(B, IN_FEATURES)                             # [B, 1600]

    # ---- Batch tiling / padding so every block is full and every store unmasked.
    tb = _choose_batch_tile(B, batch_tile)
    b_pad = _round_up(B, tb)
    if b_pad != B:
        x_flat = jnp.pad(x_flat, ((0, b_pad - B), (0, 0)))

    # ---- Weight preprocessing: bf16 MXU inputs, f32 biases, lane-dense class dim.
    w1_bf = w1.astype(jnp.bfloat16)
    b1_f32 = b1.reshape(1, HIDDEN).astype(jnp.float32)
    w2_pad = jnp.zeros((HIDDEN, CLASSES_PAD), jnp.bfloat16)
    w2_pad = w2_pad.at[:, :NUM_CLASSES].set(w2.astype(jnp.bfloat16))
    b2_pad = jnp.full((1, CLASSES_PAD), NEG_BIG, jnp.float32)
    b2_pad = b2_pad.at[:, :NUM_CLASSES].set(
        b2.reshape(1, NUM_CLASSES).astype(jnp.float32))

    # ---- Cost hint for XLA scheduling of the surrounding glue ops.
    flops = 2 * b_pad * (IN_FEATURES * HIDDEN + HIDDEN * CLASSES_PAD)
    bytes_accessed = (
        b_pad * IN_FEATURES * 2          # x (bf16) in
        + b_pad * CLASSES_PAD * 2        # out (bf16)
        + IN_FEATURES * HIDDEN * 2       # w1 (bf16)
        + HIDDEN * CLASSES_PAD * 2       # w2 (bf16)
        + (HIDDEN + CLASSES_PAD) * 4)    # biases (f32)
    cost = pl.CostEstimate(flops=flops,
                           transcendentals=b_pad * (CLASSES_PAD + 1),
                           bytes_accessed=bytes_accessed)

    grid = (b_pad // tb,)
    out = pl.pallas_call(
        _mlp_softmax_kernel,
        out_shape=jax.ShapeDtypeStruct((b_pad, CLASSES_PAD), jnp.bfloat16),
        grid=grid,
        in_specs=[
            pl.BlockSpec((tb, IN_FEATURES), lambda i: (i, 0)),        # x: batch-tiled
            pl.BlockSpec((IN_FEATURES, HIDDEN), lambda i: (0, 0)),    # w1: resident
            pl.BlockSpec((1, HIDDEN), lambda i: (0, 0)),              # b1: resident
            pl.BlockSpec((HIDDEN, CLASSES_PAD), lambda i: (0, 0)),    # w2: resident
            pl.BlockSpec((1, CLASSES_PAD), lambda i: (0, 0)),         # b2: resident
        ],
        out_specs=pl.BlockSpec((tb, CLASSES_PAD), lambda i: (i, 0)),
        compiler_params=pltpu.CompilerParams(
            dimension_semantics=("parallel",),
            vmem_limit_bytes=32 * 1024 * 1024),
        cost_estimate=cost,
    )(x_flat, w1_bf, b1_f32, w2_pad, b2_pad)

    # Drop padded rows / class columns and restore f32; tiny op, fused by XLA
    # inside this same jit (no separate read-modify pass over [b_pad, 128]).
    return out[:B, :NUM_CLASSES].astype(jnp.float32)


def init_params(key):
    k_emb, k_w1, k_b1, k_w2, k_b2 = jax.random.split(key, 5)
    emb_table = jax.random.normal(k_emb, (NUM_EMBEDDINGS, EMBED_DIM), jnp.float32)
    # torch.nn.Linear default init: U(-1/sqrt(fan_in), 1/sqrt(fan_in))
    lim1 = 1.0 / IN_FEATURES ** 0.5
    w1 = jax.random.uniform(k_w1, (IN_FEATURES, HIDDEN), jnp.float32, -lim1, lim1)
    b1 = jax.random.uniform(k_b1, (HIDDEN,), jnp.float32, -lim1, lim1)
    lim2 = 1.0 / HIDDEN ** 0.5
    w2 = jax.random.uniform(k_w2, (HIDDEN, NUM_CLASSES), jnp.float32, -lim2, lim2)
    b2 = jax.random.uniform(k_b2, (NUM_CLASSES,), jnp.float32, -lim2, lim2)
    return emb_table, w1, b1, w2, b2


def _reference_forward(tokens, emb_table, w1, b1, w2, b2):
    # Pure-JAX f32 reference of the PyTorch forward (eval mode).
    x = jnp.take(emb_table, tokens, axis=0).reshape(tokens.shape[0], IN_FEATURES)
    h = jnp.maximum(x @ w1 + b1, 0.0)
    logits = h @ w2 + b2
    return jax.nn.softmax(logits, axis=-1)


def _check(tokens, params):
    out = employment_forward(tokens, *params)
    out = jax.block_until_ready(out)
    B = tokens.shape[0]
    assert out.shape == (B, NUM_CLASSES)
    assert out.dtype == jnp.float32
    # Softmax rows sum to ~1 (loose tol: approx reciprocal + bf16 matmuls/output).
    assert bool(jnp.all(jnp.abs(jnp.sum(out, axis=-1) - 1.0) < 1e-2))
    # Match the f32 reference within bf16 tolerance.
    ref = _reference_forward(tokens, *params)
    assert bool(jnp.max(jnp.abs(out - ref)) < 3e-2)


if __name__ == "__main__":
    key = jax.random.PRNGKey(0)
    k_tok1, k_tok2, k_params = jax.random.split(key, 3)
    params = init_params(k_params)

    # Small batch: single full-extent block (grid=(1,)).
    tokens_small = jax.random.randint(k_tok1, (2, SEQ_LEN), 0, NUM_EMBEDDINGS,
                                      dtype=jnp.int32)
    _check(tokens_small, params)

    # Larger batch: exercises the multi-step (>= 2, even) batch-tiled grid path.
    tokens_big = jax.random.randint(k_tok2, (40, SEQ_LEN), 0, NUM_EMBEDDINGS,
                                    dtype=jnp.int32)
    _check(tokens_big, params)

    print("KERNEL_OK")
</pallas_src>

<mosaic_0001>
module attributes {stable_mosaic.version = 11 : i64} {
  func.func @_mlp_softmax_kernel(%arg0: i32, %arg1: memref<8x1600xbf16, #tpu.memory_space<vmem>>, %arg2: memref<1600x256xbf16, #tpu.memory_space<vmem>>, %arg3: memref<1x256xf32, #tpu.memory_space<vmem>>, %arg4: memref<256x128xbf16, #tpu.memory_space<vmem>>, %arg5: memref<1x128xf32, #tpu.memory_space<vmem>>, %arg6: memref<8x128xbf16, #tpu.memory_space<vmem>>) attributes {dimension_semantics = [#tpu.dimension_semantics<parallel>], iteration_bounds = array<i64: 1>, scalar_prefetch = 0 : i64, scratch_operands = 0 : i64, tpu.core_type = #tpu.core_type<tc>, window_params = [{transform_indices = @transform_0, window_bounds = array<i64: 8, 1600>}, {pipeline_mode = #tpu.pipeline_mode<synchronous>, transform_indices = @transform_1, window_bounds = array<i64: 1600, 256>}, {pipeline_mode = #tpu.pipeline_mode<synchronous>, transform_indices = @transform_2, window_bounds = array<i64: 1, 256>}, {pipeline_mode = #tpu.pipeline_mode<synchronous>, transform_indices = @transform_3, window_bounds = array<i64: 256, 128>}, {pipeline_mode = #tpu.pipeline_mode<synchronous>, transform_indices = @transform_4, window_bounds = array<i64: 1, 128>}, {transform_indices = @transform_5, window_bounds = array<i64: 8, 128>}]} {
    %c0 = arith.constant 0 : index
    %c0_0 = arith.constant 0 : index
    %0 = vector.load %arg1[%c0, %c0_0] : memref<8x1600xbf16, #tpu.memory_space<vmem>>, vector<8x1600xbf16>
    %c0_1 = arith.constant 0 : index
    %c0_2 = arith.constant 0 : index
    %1 = vector.load %arg2[%c0_1, %c0_2] : memref<1600x256xbf16, #tpu.memory_space<vmem>>, vector<1600x256xbf16>
    %cst = arith.constant dense<0.000000e+00> : vector<8x256xf32>
    %2 = tpu.matmul %0, %1, %cst {dimension_numbers = #tpu.dot_dimension_numbers<[1], [0], [0], [1], [0, 0, 1, 1], [], []>} : vector<8x1600xbf16>, vector<1600x256xbf16>, vector<8x256xf32> -> vector<8x256xf32>
    %c0_3 = arith.constant 0 : index
    %c0_4 = arith.constant 0 : index
    %3 = vector.load %arg3[%c0_3, %c0_4] : memref<1x256xf32, #tpu.memory_space<vmem>>, vector<1x256xf32>
    %4 = vector.broadcast %3 : vector<1x256xf32> to vector<8x256xf32>
    %5 = arith.addf %2, %4 : vector<8x256xf32>
    %cst_5 = arith.constant 0.000000e+00 : f32
    %6 = vector.broadcast %cst_5 : f32 to vector<8x256xf32>
    %7 = arith.maximumf %5, %6 : vector<8x256xf32>
    %8 = arith.truncf %7 : vector<8x256xf32> to vector<8x256xbf16>
    %c0_6 = arith.constant 0 : index
    %c0_7 = arith.constant 0 : index
    %9 = vector.load %arg4[%c0_6, %c0_7] : memref<256x128xbf16, #tpu.memory_space<vmem>>, vector<256x128xbf16>
    %cst_8 = arith.constant dense<0.000000e+00> : vector<8x128xf32>
    %10 = tpu.matmul %8, %9, %cst_8 {dimension_numbers = #tpu.dot_dimension_numbers<[1], [0], [0], [1], [0, 0, 1, 1], [], []>} : vector<8x256xbf16>, vector<256x128xbf16>, vector<8x128xf32> -> vector<8x128xf32>
    %c0_9 = arith.constant 0 : index
    %c0_10 = arith.constant 0 : index
    %11 = vector.load %arg5[%c0_9, %c0_10] : memref<1x128xf32, #tpu.memory_space<vmem>>, vector<1x128xf32>
    %12 = vector.broadcast %11 : vector<1x128xf32> to vector<8x128xf32>
    %13 = arith.addf %10, %12 : vector<8x128xf32>
    %cst_11 = arith.constant dense<0xFF800000> : vector<8xf32>
    %14 = vector.multi_reduction <maximumf>, %13, %cst_11 [1] : vector<8x128xf32> to vector<8xf32>
    %15 = vector.shape_cast %14 : vector<8xf32> to vector<8x1xf32>
    %16 = vector.broadcast %15 : vector<8x1xf32> to vector<8x128xf32>
    %17 = arith.subf %13, %16 : vector<8x128xf32>
    %18 = math.exp %17 : vector<8x128xf32>
    %cst_12 = arith.constant dense<0.000000e+00> : vector<8xf32>
    %19 = vector.multi_reduction <add>, %18, %cst_12 [1] : vector<8x128xf32> to vector<8xf32>
    %20 = vector.shape_cast %19 : vector<8xf32> to vector<8x1xf32>
    %21 = tpu.reciprocal %20 {approx = true} : vector<8x1xf32> -> vector<8x1xf32>
    %22 = vector.broadcast %21 : vector<8x1xf32> to vector<8x128xf32>
    %23 = arith.mulf %18, %22 : vector<8x128xf32>
    %24 = arith.truncf %23 : vector<8x128xf32> to vector<8x128xbf16>
    %c0_13 = arith.constant 0 : index
    %c0_14 = arith.constant 0 : index
    %25 = vector.load %arg6[%c0_13, %c0_14] : memref<8x128xbf16, #tpu.memory_space<vmem>>, vector<8x128xbf16>
    tpu.vector_store %arg6[%c0_13, %c0_14], %24 {strides = array<i32>} : memref<8x128xbf16, #tpu.memory_space<vmem>>, vector<8x128xbf16>,
    return
  }
  func.func @transform_0(%arg0: i32) -> (i32, i32) {
    %c0_i32 = arith.constant 0 : i32
    %c0_i32_0 = arith.constant 0 : i32
    return %arg0, %c0_i32 : i32, i32
  }
  func.func @transform_1(%arg0: i32) -> (i32, i32) {
    %c0_i32 = arith.constant 0 : i32
    %c0_i32_0 = arith.constant 0 : i32
    %c0_i32_1 = arith.constant 0 : i32
    return %c0_i32, %c0_i32_0 : i32, i32
  }
  func.func @transform_2(%arg0: i32) -> (i32, i32) {
    %c0_i32 = arith.constant 0 : i32
    %c0_i32_0 = arith.constant 0 : i32
    %c0_i32_1 = arith.constant 0 : i32
    return %c0_i32, %c0_i32_0 : i32, i32
  }
  func.func @transform_3(%arg0: i32) -> (i32, i32) {
    %c0_i32 = arith.constant 0 : i32
    %c0_i32_0 = arith.constant 0 : i32
    %c0_i32_1 = arith.constant 0 : i32
    return %c0_i32, %c0_i32_0 : i32, i32
  }
  func.func @transform_4(%arg0: i32) -> (i32, i32) {
    %c0_i32 = arith.constant 0 : i32
    %c0_i32_0 = arith.constant 0 : i32
    %c0_i32_1 = arith.constant 0 : i32
    return %c0_i32, %c0_i32_0 : i32, i32
  }
  func.func @transform_5(%arg0: i32) -> (i32, i32) {
    %c0_i32 = arith.constant 0 : i32
    %c0_i32_0 = arith.constant 0 : i32
    return %arg0, %c0_i32 : i32, i32
  }
}

</mosaic_0001>

<bundles_post_ra>
// kernel: employment_forward.1
= control target key start
LH: loop header
LB: loop body
LE: loop exit
PB: predicated region body
PF: predicated region fallthrough
CT: control target
= control target key end

     0   :  { %vm1285_vm0 = vcmask 523264   ;;  %s3090_s1 = inlined_call_operand.vmem [shape: bf16[1600,256], index: 1, kind: input, shape index: {}]   ;;  %s3091_s0 = inlined_call_operand.vmem [shape: bf16[8,1600], index: 0, kind: input, shape index: {}]   ;;  %s3092_s3 = inlined_call_operand.vmem [shape: bf16[256,128], index: 3, kind: input, shape index: {}]   ;;  %s3093_s2 = inlined_call_operand.vmem [shape: f32[1,256], index: 2, kind: input, shape index: {}]   ;;  %s3094_s4 = inlined_call_operand.vmem [shape: f32[1,128], index: 4, kind: input, shape index: {}]   ;;  %s3095_s5 = inlined_call_operand.vmem [shape: bf16[8,128], index: 5, kind: output, shape index: {}]  }
   0x1   :  { %v2024_v0 = vld [vmem:[%s3090_s1 + $0x74] ss:$8 sps:$4 sm:$0xff]   ;;  %v2026_v1 = vld [vmem:[%s3090_s1 + $0x70] ss:$8 sps:$4 sm:$0xff]   ;;  %v2030_v4 = vld [vmem:[%s3090_s1 + $0x64] ss:$8 sps:$4 sm:$0xff]  }
   0x2   :  { %1289 = vmatprep.subr.bf16.mxu0 %v2024_v0  ;;  %v2027_v2 = vld [vmem:[%s3090_s1 + $0x174] ss:$8 sps:$4 sm:$0xff]   ;;  %v2029_v3 = vld [vmem:[%s3090_s1 + $0x170] ss:$8 sps:$4 sm:$0xff]   ;;  %v2032_v5 = vld [vmem:[%s3090_s1 + $0x60] ss:$8 sps:$4 sm:$0xff]  }
   0x3   :  { %1290 = vmatpush1.bf16.msra.mxu0 %v2026_v1  ;;  %1330 = vmatprep.subr.bf16.mxu1 %v2027_v2  ;;  %v2033_v6 = vld [vmem:[%s3090_s1 + $0x164] ss:$8 sps:$4 sm:$0xff]   ;;  %v2035_v7 = vld [vmem:[%s3090_s1 + $0x160] ss:$8 sps:$4 sm:$0xff]   ;;  %v2036_v8 = vld [vmem:[%s3090_s1 + $0x54] ss:$8 sps:$4 sm:$0xff]  }
   0x4   :  { %1331 = vmatpush1.bf16.msra.mxu1 %v2029_v3  ;;  %1291 = vmatprep.subr.bf16.mxu0 %v2030_v4  ;;  %v2038_v9 = vld [vmem:[%s3090_s1 + $0x50] ss:$8 sps:$4 sm:$0xff]   ;;  %v2039_v10 = vld [vmem:[%s3090_s1 + $0x154] ss:$8 sps:$4 sm:$0xff]   ;;  %v2042_v11 = vld [vmem:[%s3090_s1 + $0x44] ss:$8 sps:$4 sm:$0xff]  }
   0x5   :  { %1332 = vmatprep.subr.bf16.mxu1 %v2033_v6  ;;  %v2041_v12 = vld [vmem:[%s3090_s1 + $0x150] ss:$8 sps:$4 sm:$0xff]   ;;  %v2045_v13 = vld [vmem:[%s3090_s1 + $0x144] ss:$8 sps:$4 sm:$0xff]   ;;  %v2044_v14 = vld [vmem:[%s3090_s1 + $0x40] ss:$8 sps:$4 sm:$0xff]  }
   0x6   :  { %v2048_v15 = vld [vmem:[%s3090_s1 + $0x34] ss:$8 sps:$4 sm:$0xff]   ;;  %v2047_v16 = vld [vmem:[%s3090_s1 + $0x140] ss:$8 sps:$4 sm:$0xff]   ;;  %v2050_v18 = vld [vmem:[%s3090_s1 + $0x30] ss:$8 sps:$4 sm:$0xff]  }
   0x7   :  { %1292 = vmatpush1.bf16.msra.mxu0 %v2032_v5  ;;  %v2051_v17 = vld [vmem:[%s3090_s1 + $0x134] ss:$8 sps:$4 sm:$0xff]   ;;  %v2054_v19 = vld [vmem:[%s3090_s1 + $0x24] ss:$8 sps:$4 sm:$0xff]   ;;  %v2053_v20 = vld [vmem:[%s3090_s1 + $0x130] ss:$8 sps:$4 sm:$0xff]  }
   0x8   :  { %1293 = vmatprep.subr.bf16.mxu0 %v2036_v8  ;;  %1333 = vmatpush1.bf16.msra.mxu1 %v2035_v7  ;;  %v2057_v21 = vld [vmem:[%s3090_s1 + $0x124] ss:$8 sps:$4 sm:$0xff]   ;;  %v2056_v22 = vld [vmem:[%s3090_s1 + $0x20] ss:$8 sps:$4 sm:$0xff]   ;;  %v2060_v23 = vld [vmem:[%s3090_s1 + $0x14] ss:$8 sps:$4 sm:$0xff]  }
   0x9   :  { %1334 = vmatprep.subr.bf16.mxu1 %v2039_v10  ;;  %v2059_v24 = vld [vmem:[%s3090_s1 + $0x120] ss:$8 sps:$4 sm:$0xff]   ;;  %v2063_v25 = vld [vmem:[%s3090_s1 + $0x114] ss:$8 sps:$4 sm:$0xff]   ;;  %v2062_v26 = vld [vmem:[%s3090_s1 + $0x10] ss:$8 sps:$4 sm:$0xff]  }
   0xa   :  { %v2066_v27 = vld [vmem:[%s3090_s1 + $0x4] ss:$8 sps:$4 sm:$0xff]   ;;  %v2065_v28 = vld [vmem:[%s3090_s1 + $0x110] ss:$8 sps:$4 sm:$0xff]   ;;  %v2068_v30 = vld [vmem:[%s3090_s1] ss:$8 sps:$4 sm:$0xff]  }
   0xb   :  { %1294 = vmatpush1.bf16.msra.mxu0 %v2038_v9  ;;  %v2069_v29 = vld [vmem:[%s3090_s1 + $0x104] ss:$8 sps:$4 sm:$0xff]   ;;  %v2072_v31 = vld [vmem:[%s3090_s1 + $0xf4] ss:$8 sps:$4 sm:$0xff]   ;;  %v2071_v32 = vld [vmem:[%s3090_s1 + $0x100] ss:$8 sps:$4 sm:$0xff]  }
   0xc   :  { %1295 = vmatprep.subr.bf16.mxu0 %v2042_v11  ;;  %1335 = vmatpush1.bf16.msra.mxu1 %v2041_v12  ;;  %v2075_v33 = vld [vmem:[%s3090_s1 + $0x1f4] ss:$8 sps:$4 sm:$0xff]   ;;  %v2074_v34 = vld [vmem:[%s3090_s1 + $0xf0] ss:$8 sps:$4 sm:$0xff]   ;;  %v2078_v35 = vld [vmem:[%s3090_s1 + $0xe4] ss:$8 sps:$4 sm:$0xff]  }
   0xd   :  { %1336 = vmatprep.subr.bf16.mxu1 %v2045_v13  ;;  %v2077_v36 = vld [vmem:[%s3090_s1 + $0x1f0] ss:$8 sps:$4 sm:$0xff]   ;;  %v2081_v37 = vld [vmem:[%s3090_s1 + $0x1e4] ss:$8 sps:$4 sm:$0xff]   ;;  %v2080_v38 = vld [vmem:[%s3090_s1 + $0xe0] ss:$8 sps:$4 sm:$0xff]  }
   0xe   :  { %v2084_v39 = vld [vmem:[%s3090_s1 + $0xd4] ss:$8 sps:$4 sm:$0xff]   ;;  %v2083_v40 = vld [vmem:[%s3090_s1 + $0x1e0] ss:$8 sps:$4 sm:$0xff]   ;;  %v2086_v42 = vld [vmem:[%s3090_s1 + $0xd0] ss:$8 sps:$4 sm:$0xff]  }
   0xf   :  { %1296 = vmatpush1.bf16.msra.mxu0 %v2044_v14  ;;  %v2087_v41 = vld [vmem:[%s3090_s1 + $0x1d4] ss:$8 sps:$4 sm:$0xff]   ;;  %v2090_v43 = vld [vmem:[%s3090_s1 + $0xc4] ss:$8 sps:$4 sm:$0xff]   ;;  %v2089_v44 = vld [vmem:[%s3090_s1 + $0x1d0] ss:$8 sps:$4 sm:$0xff]  }
  0x10   :  { %1297 = vmatprep.subr.bf16.mxu0 %v2048_v15  ;;  %1337 = vmatpush1.bf16.msra.mxu1 %v2047_v16  ;;  %v2093_v45 = vld [vmem:[%s3090_s1 + $0x1c4] ss:$8 sps:$4 sm:$0xff]   ;;  %v2092_v47 = vld [vmem:[%s3090_s1 + $0xc0] ss:$8 sps:$4 sm:$0xff]   ;;  %v2096_v49 = vld [vmem:[%s3090_s1 + $0xb4] ss:$8 sps:$4 sm:$0xff]  }
  0x11   :  { %1338 = vmatprep.subr.bf16.mxu1 %v2051_v17  ;;  %v21_v46 = vld [vmem:[%s3091_s0] sm:$0xff]  ;;  %v22_v50 = vld [vmem:[%s3091_s0 + $0x8] sm:$0xff]  ;;  %v2099_v53 = vld [vmem:[%s3090_s1 + $0x1b4] ss:$8 sps:$4 sm:$0xff]  }
  0x12   :  { %v1771_v48 = vcombine.high %v21_v46, %v21_v46  ;;  %v2095_v51 = vld [vmem:[%s3090_s1 + $0x1c0] ss:$8 sps:$4 sm:$0xff]   ;;  %v1773_v52 = vcombine.high %v22_v50, %v22_v50  ;;  %v2098_v54 = vld [vmem:[%s3090_s1 + $0xb0] ss:$8 sps:$4 sm:$0xff]   ;;  %v2102_v55 = vld [vmem:[%s3090_s1 + $0xa4] ss:$8 sps:$4 sm:$0xff]   ;;  %v1770_v5 = vcombine.low %v21_v46, %v21_v46  ;;  %v1772_v8 = vcombine.low %v22_v50, %v22_v50 }
  0x13   :  { %1298 = vmatpush1.bf16.msra.mxu0 %v2050_v18  ;;  %v2101_v56 = vld [vmem:[%s3090_s1 + $0x1b0] ss:$8 sps:$4 sm:$0xff]   ;;  %v2105_v57 = vld [vmem:[%s3090_s1 + $0x1a4] ss:$8 sps:$4 sm:$0xff]   ;;  %v2104_v58 = vld [vmem:[%s3090_s1 + $0xa0] ss:$8 sps:$4 sm:$0xff]  }
  0x14   :  { %1299 = vmatprep.subr.bf16.mxu0 %v2054_v19  ;;  %1339 = vmatpush1.bf16.msra.mxu1 %v2053_v20  ;;  %v2108_v59 = vld [vmem:[%s3090_s1 + $0x94] ss:$8 sps:$4 sm:$0xff]   ;;  %v2107_v60 = vld [vmem:[%s3090_s1 + $0x1a0] ss:$8 sps:$4 sm:$0xff]   ;;  %v2110_v62 = vld [vmem:[%s3090_s1 + $0x90] ss:$8 sps:$4 sm:$0xff]  }
  0x15   :  { %1340 = vmatprep.subr.bf16.mxu1 %v2057_v21  ;;  %1321 = vmatprep.mubr.bf16.mxu0 %v1771_v48  ;;  %v2111_v61 = vld [vmem:[%s3090_s1 + $0x194] ss:$8 sps:$4 sm:$0xff]   ;;  %v2114_v63 = vld [vmem:[%s3090_s1 + $0x84] ss:$8 sps:$4 sm:$0xff]   ;;  %v2113_v0 = vld [vmem:[%s3090_s1 + $0x190] ss:$8 sps:$4 sm:$0xff]  }
  0x16   :  { %1362 = vmatprep.mubr.bf16.mxu1 %v1773_v52  ;;  %v2117_v1 = vld [vmem:[%s3090_s1 + $0x184] ss:$8 sps:$4 sm:$0xff]   ;;  %v2116_v2 = vld [vmem:[%s3090_s1 + $0x80] ss:$8 sps:$4 sm:$0xff]   ;;  %v2124_v3 = vld [vmem:[%s3090_s1 + $0x274] ss:$8 sps:$4 sm:$0xff]  }
  0x17   :  { %1300 = vmatpush1.bf16.msra.mxu0 %v2056_v22  ;;  %v2121_v4 = vld [vmem:[%s3090_s1 + $0x180] ss:$8 sps:$4 sm:$0xff]   ;;  %v2129_v6 = vld [vmem:[%s3090_s1 + $0x374] ss:$8 sps:$4 sm:$0xff]   ;;  %v2122_v7 = vld [vmem:[%s3090_s1 + $0x270] ss:$8 sps:$4 sm:$0xff]  }
  0x18   :  { %1301 = vmatprep.subr.bf16.mxu0 %v2060_v23  ;;  %1341 = vmatpush1.bf16.msra.mxu1 %v2059_v24  ;;  %v2132_v9 = vld [vmem:[%s3090_s1 + $0x264] ss:$8 sps:$4 sm:$0xff]   ;;  %v2127_v10 = vld [vmem:[%s3090_s1 + $0x370] ss:$8 sps:$4 sm:$0xff]   ;;  %v2130_v12 = vld [vmem:[%s3090_s1 + $0x260] ss:$8 sps:$4 sm:$0xff]  }
  0x19   :  { %1342 = vmatprep.subr.bf16.mxu1 %v2063_v25  ;;  %v2135_v11 = vld [vmem:[%s3090_s1 + $0x364] ss:$8 sps:$4 sm:$0xff]   ;;  %v2138_v13 = vld [vmem:[%s3090_s1 + $0x254] ss:$8 sps:$4 sm:$0xff]   ;;  %v2133_v14 = vld [vmem:[%s3090_s1 + $0x360] ss:$8 sps:$4 sm:$0xff]  }
  0x1a   :  { %v2141_v15 = vld [vmem:[%s3090_s1 + $0x354] ss:$8 sps:$4 sm:$0xff]   ;;  %v2136_v16 = vld [vmem:[%s3090_s1 + $0x250] ss:$8 sps:$4 sm:$0xff]   ;;  %v2144_v17 = vld [vmem:[%s3090_s1 + $0x244] ss:$8 sps:$4 sm:$0xff]  }
  0x1b   :  { %1302 = vmatpush1.bf16.msra.mxu0 %v2062_v26  ;;  %v2139_v18 = vld [vmem:[%s3090_s1 + $0x350] ss:$8 sps:$4 sm:$0xff]   ;;  %v2147_v19 = vld [vmem:[%s3090_s1 + $0x344] ss:$8 sps:$4 sm:$0xff]   ;;  %v2142_v20 = vld [vmem:[%s3090_s1 + $0x240] ss:$8 sps:$4 sm:$0xff]  }
  0x1c   :  { %1303 = vmatprep.subr.bf16.mxu0 %v2066_v27  ;;  %1343 = vmatpush1.bf16.msra.mxu1 %v2065_v28  ;;  %v2150_v21 = vld [vmem:[%s3090_s1 + $0x234] ss:$8 sps:$4 sm:$0xff]   ;;  %v2145_v22 = vld [vmem:[%s3090_s1 + $0x340] ss:$8 sps:$4 sm:$0xff]   ;;  %v2148_v24 = vld [vmem:[%s3090_s1 + $0x230] ss:$8 sps:$4 sm:$0xff]  }
  0x1d   :  { %1344 = vmatprep.subr.bf16.mxu1 %v2069_v29  ;;  %v2153_v23 = vld [vmem:[%s3090_s1 + $0x334] ss:$8 sps:$4 sm:$0xff]   ;;  %v2156_v25 = vld [vmem:[%s3090_s1 + $0x224] ss:$8 sps:$4 sm:$0xff]   ;;  %v2151_v26 = vld [vmem:[%s3090_s1 + $0x330] ss:$8 sps:$4 sm:$0xff]  }
  0x1e   :  { %v2159_v27 = vld [vmem:[%s3090_s1 + $0x324] ss:$8 sps:$4 sm:$0xff]   ;;  %v2154_v28 = vld [vmem:[%s3090_s1 + $0x220] ss:$8 sps:$4 sm:$0xff]   ;;  %v2162_v29 = vld [vmem:[%s3090_s1 + $0x214] ss:$8 sps:$4 sm:$0xff]  }
  0x1f   :  { %1304 = vmatpush1.bf16.msra.mxu0 %v2068_v30  ;;  %v2157_v30 = vld [vmem:[%s3090_s1 + $0x320] ss:$8 sps:$4 sm:$0xff]   ;;  %v2175_v46 = vld [vmem:[%s3090_s1 + $0x3f0] ss:$8 sps:$4 sm:$0xff]  }
  0x20   :  { %1305 = vmatprep.subr.bf16.mxu0 %v2072_v31  ;;  %1345 = vmatpush1.bf16.msra.mxu1 %v2071_v32  ;;  %v2165_v31 = vld [vmem:[%s3090_s1 + $0x314] ss:$8 sps:$4 sm:$0xff]   ;;  %v2178_v48 = vld [vmem:[%s3090_s1 + $0x2e0] ss:$8 sps:$4 sm:$0xff]   ;;  %v2184_v52 = vld [vmem:[%s3090_s1 + $0x2d0] ss:$8 sps:$4 sm:$0xff]  }
  0x21   :  { %1346 = vmatprep.subr.bf16.mxu1 %v2075_v33  ;;  %v2667_v32 = vld [vmem:[%s3091_s0 + $0x10] sm:$0xff]  ;;  %v2181_v50 = vld [vmem:[%s3090_s1 + $0x3e0] ss:$8 sps:$4 sm:$0xff]  }
  0x22   :  { %v2160_v33 = vld [vmem:[%s3090_s1 + $0x210] ss:$8 sps:$4 sm:$0xff]  }
  0x23   :  { %1306 = vmatpush2.bf16.msra.mxu0 %v2074_v34  ;;  %v1775_v34 = vcombine.high %v2667_v32, %v2667_v32 }
  0x24   :  { %1307 = vmatprep.subr.bf16.mxu0 %v2078_v35  ;;  %1347 = vmatpush2.bf16.msra.mxu1 %v2077_v36  ;;  %v2677_v35 = vld [vmem:[%s3091_s0 + $0x18] sm:$0xff]  ;;  %v2168_v36 = vld [vmem:[%s3090_s1 + $0x204] ss:$8 sps:$4 sm:$0xff]  }
  0x25   :  { %1348 = vmatprep.subr.bf16.mxu1 %v2081_v37  ;;  %v1777_v37 = vcombine.high %v2677_v35, %v2677_v35 }
  0x27   :  { %1308 = vmatpush2.bf16.msra.mxu0 %v2080_v38  ;;  %v2163_v38 = vld [vmem:[%s3090_s1 + $0x310] ss:$8 sps:$4 sm:$0xff]  }
  0x28   :  { %1309 = vmatprep.subr.bf16.mxu0 %v2084_v39  ;;  %1349 = vmatpush2.bf16.msra.mxu1 %v2083_v40  ;;  %v2171_v39 = vld [vmem:[%s3090_s1 + $0x304] ss:$8 sps:$4 sm:$0xff]   ;;  %v2166_v40 = vld [vmem:[%s3090_s1 + $0x200] ss:$8 sps:$4 sm:$0xff]  }
  0x29   :  { %1350 = vmatprep.subr.bf16.mxu1 %v2087_v41  ;;  %v2174_v41 = vld [vmem:[%s3090_s1 + $0x2f4] ss:$8 sps:$4 sm:$0xff]  }
  0x2b   :  { %1310 = vmatpush2.bf16.msra.mxu0 %v2086_v42  ;;  %v2169_v42 = vld [vmem:[%s3090_s1 + $0x300] ss:$8 sps:$4 sm:$0xff]  }
  0x2c   :  { %1311 = vmatprep.subr.bf16.mxu0 %v2090_v43  ;;  %1351 = vmatpush2.bf16.msra.mxu1 %v2089_v44  ;;  %v2177_v43 = vld [vmem:[%s3090_s1 + $0x3f4] ss:$8 sps:$4 sm:$0xff]   ;;  %v2172_v44 = vld [vmem:[%s3090_s1 + $0x2f0] ss:$8 sps:$4 sm:$0xff]  }
  0x2d   :  { %1352 = vmatprep.subr.bf16.mxu1 %v2093_v45  ;;  %v2180_v45 = vld [vmem:[%s3090_s1 + $0x2e4] ss:$8 sps:$4 sm:$0xff]  }
  0x2f   :  { %1312 = vmatpush2.bf16.msra.mxu0 %v2092_v47  ;;  %v2183_v47 = vld [vmem:[%s3090_s1 + $0x3e4] ss:$8 sps:$4 sm:$0xff]  }
  0x30   :  { %1313 = vmatprep.subr.bf16.mxu0 %v2096_v49  ;;  %1353 = vmatpush2.bf16.msra.mxu1 %v2095_v51  ;;  %v2186_v49 = vld [vmem:[%s3090_s1 + $0x2d4] ss:$8 sps:$4 sm:$0xff]  }
  0x31   :  { %1354 = vmatprep.subr.bf16.mxu1 %v2099_v53  ;;  %v2189_v51 = vld [vmem:[%s3090_s1 + $0x3d4] ss:$8 sps:$4 sm:$0xff]   ;;  %v2192_v53 = vld [vmem:[%s3090_s1 + $0x2c4] ss:$8 sps:$4 sm:$0xff]  }
  0x33   :  { %1314 = vmatpush2.bf16.msra.mxu0 %v2098_v54  ;;  %v2187_v54 = vld [vmem:[%s3090_s1 + $0x3d0] ss:$8 sps:$4 sm:$0xff]  }
  0x34   :  { %1315 = vmatprep.subr.bf16.mxu0 %v2102_v55  ;;  %1355 = vmatpush2.bf16.msra.mxu1 %v2101_v56  ;;  %v2195_v55 = vld [vmem:[%s3090_s1 + $0x3c4] ss:$8 sps:$4 sm:$0xff]   ;;  %v2190_v56 = vld [vmem:[%s3090_s1 + $0x2c0] ss:$8 sps:$4 sm:$0xff]  }
  0x35   :  { %1356 = vmatprep.subr.bf16.mxu1 %v2105_v57  ;;  %v2198_v57 = vld [vmem:[%s3090_s1 + $0x2b4] ss:$8 sps:$4 sm:$0xff]  }
  0x37   :  { %1316 = vmatpush2.bf16.msra.mxu0 %v2104_v58  ;;  %v2193_v58 = vld [vmem:[%s3090_s1 + $0x3c0] ss:$8 sps:$4 sm:$0xff]  }
  0x38   :  { %1317 = vmatprep.subr.bf16.mxu0 %v2108_v59  ;;  %1357 = vmatpush2.bf16.msra.mxu1 %v2107_v60  ;;  %v2201_v59 = vld [vmem:[%s3090_s1 + $0x3b4] ss:$8 sps:$4 sm:$0xff]   ;;  %v2196_v60 = vld [vmem:[%s3090_s1 + $0x2b0] ss:$8 sps:$4 sm:$0xff]  }
  0x39   :  { %1358 = vmatprep.subr.bf16.mxu1 %v2111_v61  ;;  %v2204_v61 = vld [vmem:[%s3090_s1 + $0x2a4] ss:$8 sps:$4 sm:$0xff]  }
  0x3b   :  { %1318 = vmatpush2.bf16.msra.mxu0 %v2110_v62  ;;  %v2199_v62 = vld [vmem:[%s3090_s1 + $0x3b0] ss:$8 sps:$4 sm:$0xff]  }
  0x3c   :  { %1319 = vmatprep.subr.bf16.mxu0 %v2114_v63  ;;  %1359 = vmatpush2.bf16.msra.mxu1 %v2113_v0  ;;  %v2207_v63 = vld [vmem:[%s3090_s1 + $0x3a4] ss:$8 sps:$4 sm:$0xff]   ;;  %v2202_v0 = vld [vmem:[%s3090_s1 + $0x2a0] ss:$8 sps:$4 sm:$0xff]  }
  0x3d   :  { %1360 = vmatprep.subr.bf16.mxu1 %v2117_v1  ;;  %v2210_v1 = vld [vmem:[%s3090_s1 + $0x294] ss:$8 sps:$4 sm:$0xff]  }
  0x3f   :  { %1320 = vmatpush2.bf16.msra.mxu0 %v2116_v2  ;;  %v2205_v2 = vld [vmem:[%s3090_s1 + $0x3a0] ss:$8 sps:$4 sm:$0xff]  }
  0x40   :  { %1371 = vmatprep.subr.bf16.mxu0 %v2124_v3  ;;  %1361 = vmatpush2.bf16.msra.mxu1 %v2121_v4  ;;  %v2213_v3 = vld [vmem:[%s3090_s1 + $0x394] ss:$8 sps:$4 sm:$0xff]   ;;  %v2208_v4 = vld [vmem:[%s3090_s1 + $0x290] ss:$8 sps:$4 sm:$0xff]  }
  0x41   :  { %1412 = vmatprep.subr.bf16.mxu1 %v2129_v6  ;;  %v2211_v6 = vld [vmem:[%s3090_s1 + $0x390] ss:$8 sps:$4 sm:$0xff]  }
  0x42   :  { %1322 = vmatmul.mubr.bf16.vlgmr.msra.gmra.mxu0 %v1770_v5  ;;  %v2216_v5 = vld [vmem:[%s3090_s1 + $0x284] ss:$8 sps:$4 sm:$0xff]  }
  0x43   :  { %1372 = vmatpush1.bf16.msra.mxu0 %v2122_v7  ;;  %1363 = vmatmul.mubr.bf16.vlgmr.msra.gmra.mxu1 %v1772_v8  ;;  %v2219_v7 = vld [vmem:[%s3090_s1 + $0x384] ss:$8 sps:$4 sm:$0xff]   ;;  %v2214_v8 = vld [vmem:[%s3090_s1 + $0x280] ss:$8 sps:$4 sm:$0xff]  }
  0x44   :  { %1373 = vmatprep.subr.bf16.mxu0 %v2132_v9  ;;  %1413 = vmatpush1.bf16.msra.mxu1 %v2127_v10  ;;  %v2224_v9 = vld [vmem:[%s3090_s1 + $0x474] ss:$8 sps:$4 sm:$0xff]   ;;  %v2217_v10 = vld [vmem:[%s3090_s1 + $0x380] ss:$8 sps:$4 sm:$0xff]  }
  0x45   :  { %1414 = vmatprep.subr.bf16.mxu1 %v2135_v11  ;;  %1403 = vmatprep.mubr.bf16.mxu0 %v1775_v34  ;;  %v1774_v11 = vcombine.low %v2667_v32, %v2667_v32  ;;  %v2245_v32 = vld [vmem:[%s3090_s1 + $0x540] ss:$8 sps:$4 sm:$0xff]   ;;  %v2248_v34 = vld [vmem:[%s3090_s1 + $0x430] ss:$8 sps:$4 sm:$0xff]  }
  0x46   :  { %1444 = vmatprep.mubr.bf16.mxu1 %v1777_v37  ;;  %v2259_v37 = vld [vmem:[%s3090_s1 + $0x524] ss:$8 sps:$4 sm:$0xff]  }
  0x47   :  { %1374 = vmatpush1.bf16.msra.mxu0 %v2130_v12  ;;  %v2229_v12 = vld [vmem:[%s3090_s1 + $0x574] ss:$8 sps:$4 sm:$0xff]  }
  0x48   :  { %1375 = vmatprep.subr.bf16.mxu0 %v2138_v13  ;;  %1415 = vmatpush1.bf16.msra.mxu1 %v2133_v14  ;;  %v2222_v13 = vld [vmem:[%s3090_s1 + $0x470] ss:$8 sps:$4 sm:$0xff]   ;;  %v1776_v14 = vcombine.low %v2677_v35, %v2677_v35  ;;  %v2256_v35 = vld [vmem:[%s3090_s1 + $0x424] ss:$8 sps:$4 sm:$0xff]  }
  0x49   :  { %1416 = vmatprep.subr.bf16.mxu1 %v2141_v15  ;;  %v2232_v15 = vld [vmem:[%s3090_s1 + $0x464] ss:$8 sps:$4 sm:$0xff]  }
  0x4b   :  { %1376 = vmatpush1.bf16.msra.mxu0 %v2136_v16  ;;  %v2227_v16 = vld [vmem:[%s3090_s1 + $0x570] ss:$8 sps:$4 sm:$0xff]  }
  0x4c   :  { %1377 = vmatprep.subr.bf16.mxu0 %v2144_v17  ;;  %1417 = vmatpush1.bf16.msra.mxu1 %v2139_v18  ;;  %v2814_v17 = vld [vmem:[%s3091_s0 + $0x20] sm:$0xff] }
  0x4d   :  { %1418 = vmatprep.subr.bf16.mxu1 %v2147_v19  ;;  %v2230_v18 = vld [vmem:[%s3090_s1 + $0x460] ss:$8 sps:$4 sm:$0xff]   ;;  %v2235_v19 = vld [vmem:[%s3090_s1 + $0x564] ss:$8 sps:$4 sm:$0xff]  }
  0x4f   :  { %1378 = vmatpush1.bf16.msra.mxu0 %v2142_v20  ;;  %v1779_v20 = vcombine.high %v2814_v17, %v2814_v17 }
  0x50   :  { %1379 = vmatprep.subr.bf16.mxu0 %v2150_v21  ;;  %1419 = vmatpush1.bf16.msra.mxu1 %v2145_v22  ;;  %v2827_v21 = vld [vmem:[%s3091_s0 + $0x28] sm:$0xff]  ;;  %v2238_v22 = vld [vmem:[%s3090_s1 + $0x454] ss:$8 sps:$4 sm:$0xff]  }
  0x51   :  { %1420 = vmatprep.subr.bf16.mxu1 %v2153_v23  ;;  %v1781_v23 = vcombine.high %v2827_v21, %v2827_v21 }
  0x53   :  { %1380 = vmatpush1.bf16.msra.mxu0 %v2148_v24  ;;  %v2233_v24 = vld [vmem:[%s3090_s1 + $0x560] ss:$8 sps:$4 sm:$0xff]  }
  0x54   :  { %1381 = vmatprep.subr.bf16.mxu0 %v2156_v25  ;;  %1421 = vmatpush1.bf16.msra.mxu1 %v2151_v26  ;;  %v2241_v25 = vld [vmem:[%s3090_s1 + $0x554] ss:$8 sps:$4 sm:$0xff]   ;;  %v2236_v26 = vld [vmem:[%s3090_s1 + $0x450] ss:$8 sps:$4 sm:$0xff]  }
  0x55   :  { %1422 = vmatprep.subr.bf16.mxu1 %v2159_v27  ;;  %v2244_v27 = vld [vmem:[%s3090_s1 + $0x444] ss:$8 sps:$4 sm:$0xff]  }
  0x57   :  { %1382 = vmatpush1.bf16.msra.mxu0 %v2154_v28  ;;  %v2239_v28 = vld [vmem:[%s3090_s1 + $0x550] ss:$8 sps:$4 sm:$0xff]  }
  0x58   :  { %1383 = vmatprep.subr.bf16.mxu0 %v2162_v29  ;;  %1423 = vmatpush1.bf16.msra.mxu1 %v2157_v30  ;;  %v2247_v29 = vld [vmem:[%s3090_s1 + $0x544] ss:$8 sps:$4 sm:$0xff]   ;;  %v2242_v30 = vld [vmem:[%s3090_s1 + $0x440] ss:$8 sps:$4 sm:$0xff]  }
  0x59   :  { %1424 = vmatprep.subr.bf16.mxu1 %v2165_v31  ;;  %v2250_v31 = vld [vmem:[%s3090_s1 + $0x434] ss:$8 sps:$4 sm:$0xff]  }
  0x5b   :  { %1384 = vmatpush1.bf16.msra.mxu0 %v2160_v33  ;;  %v2253_v33 = vld [vmem:[%s3090_s1 + $0x534] ss:$8 sps:$4 sm:$0xff]  }
  0x5c   :  { %1385 = vmatprep.subr.bf16.mxu0 %v2168_v36  ;;  %1425 = vmatpush1.bf16.msra.mxu1 %v2163_v38  ;;  %v2251_v36 = vld [vmem:[%s3090_s1 + $0x530] ss:$8 sps:$4 sm:$0xff]   ;;  %v2254_v38 = vld [vmem:[%s3090_s1 + $0x420] ss:$8 sps:$4 sm:$0xff]  }
  0x5d   :  { %1426 = vmatprep.subr.bf16.mxu1 %v2171_v39  ;;  %v2262_v39 = vld [vmem:[%s3090_s1 + $0x414] ss:$8 sps:$4 sm:$0xff]  }
  0x5f   :  { %1386 = vmatpush1.bf16.msra.mxu0 %v2166_v40  ;;  %v2257_v40 = vld [vmem:[%s3090_s1 + $0x520] ss:$8 sps:$4 sm:$0xff]  }
  0x60   :  { %1387 = vmatprep.subr.bf16.mxu0 %v2174_v41  ;;  %1427 = vmatpush1.bf16.msra.mxu1 %v2169_v42  ;;  %v2265_v41 = vld [vmem:[%s3090_s1 + $0x514] ss:$8 sps:$4 sm:$0xff]   ;;  %v2260_v42 = vld [vmem:[%s3090_s1 + $0x410] ss:$8 sps:$4 sm:$0xff]  }
  0x61   :  { %1428 = vmatprep.subr.bf16.mxu1 %v2177_v43  ;;  %v2268_v43 = vld [vmem:[%s3090_s1 + $0x404] ss:$8 sps:$4 sm:$0xff]  }
  0x63   :  { %1388 = vmatpush2.bf16.msra.mxu0 %v2172_v44  ;;  %v2263_v44 = vld [vmem:[%s3090_s1 + $0x510] ss:$8 sps:$4 sm:$0xff]  }
  0x64   :  { %1389 = vmatprep.subr.bf16.mxu0 %v2180_v45  ;;  %1429 = vmatpush2.bf16.msra.mxu1 %v2175_v46  ;;  %v2271_v45 = vld [vmem:[%s3090_s1 + $0x504] ss:$8 sps:$4 sm:$0xff]   ;;  %v2266_v46 = vld [vmem:[%s3090_s1 + $0x400] ss:$8 sps:$4 sm:$0xff]  }
  0x65   :  { %1430 = vmatprep.subr.bf16.mxu1 %v2183_v47  ;;  %v2274_v47 = vld [vmem:[%s3090_s1 + $0x4f4] ss:$8 sps:$4 sm:$0xff]  }
  0x67   :  { %1390 = vmatpush2.bf16.msra.mxu0 %v2178_v48  ;;  %v2269_v48 = vld [vmem:[%s3090_s1 + $0x500] ss:$8 sps:$4 sm:$0xff]  }
  0x68   :  { %1391 = vmatprep.subr.bf16.mxu0 %v2186_v49  ;;  %1431 = vmatpush2.bf16.msra.mxu1 %v2181_v50  ;;  %v2277_v49 = vld [vmem:[%s3090_s1 + $0x5f4] ss:$8 sps:$4 sm:$0xff]   ;;  %v2272_v50 = vld [vmem:[%s3090_s1 + $0x4f0] ss:$8 sps:$4 sm:$0xff]  }
  0x69   :  { %1432 = vmatprep.subr.bf16.mxu1 %v2189_v51  ;;  %v2280_v51 = vld [vmem:[%s3090_s1 + $0x4e4] ss:$8 sps:$4 sm:$0xff]  }
  0x6b   :  { %1392 = vmatpush2.bf16.msra.mxu0 %v2184_v52  ;;  %v2275_v52 = vld [vmem:[%s3090_s1 + $0x5f0] ss:$8 sps:$4 sm:$0xff]  }
  0x6c   :  { %1393 = vmatprep.subr.bf16.mxu0 %v2192_v53  ;;  %1433 = vmatpush2.bf16.msra.mxu1 %v2187_v54  ;;  %v2283_v53 = vld [vmem:[%s3090_s1 + $0x5e4] ss:$8 sps:$4 sm:$0xff]   ;;  %v2278_v54 = vld [vmem:[%s3090_s1 + $0x4e0] ss:$8 sps:$4 sm:$0xff]  }
  0x6d   :  { %1434 = vmatprep.subr.bf16.mxu1 %v2195_v55  ;;  %v2286_v55 = vld [vmem:[%s3090_s1 + $0x4d4] ss:$8 sps:$4 sm:$0xff]  }
  0x6f   :  { %1394 = vmatpush2.bf16.msra.mxu0 %v2190_v56  ;;  %v2281_v56 = vld [vmem:[%s3090_s1 + $0x5e0] ss:$8 sps:$4 sm:$0xff]  }
  0x70   :  { %1395 = vmatprep.subr.bf16.mxu0 %v2198_v57  ;;  %1435 = vmatpush2.bf16.msra.mxu1 %v2193_v58  ;;  %v2289_v57 = vld [vmem:[%s3090_s1 + $0x5d4] ss:$8 sps:$4 sm:$0xff]   ;;  %v2284_v58 = vld [vmem:[%s3090_s1 + $0x4d0] ss:$8 sps:$4 sm:$0xff]  }
  0x71   :  { %1436 = vmatprep.subr.bf16.mxu1 %v2201_v59  ;;  %v2292_v59 = vld [vmem:[%s3090_s1 + $0x4c4] ss:$8 sps:$4 sm:$0xff]  }
  0x73   :  { %1396 = vmatpush2.bf16.msra.mxu0 %v2196_v60  ;;  %v2287_v60 = vld [vmem:[%s3090_s1 + $0x5d0] ss:$8 sps:$4 sm:$0xff]  }
  0x74   :  { %1397 = vmatprep.subr.bf16.mxu0 %v2204_v61  ;;  %1437 = vmatpush2.bf16.msra.mxu1 %v2199_v62  ;;  %v2295_v61 = vld [vmem:[%s3090_s1 + $0x5c4] ss:$8 sps:$4 sm:$0xff]   ;;  %v2290_v62 = vld [vmem:[%s3090_s1 + $0x4c0] ss:$8 sps:$4 sm:$0xff]  }
  0x75   :  { %1438 = vmatprep.subr.bf16.mxu1 %v2207_v63  ;;  %v2298_v63 = vld [vmem:[%s3090_s1 + $0x4b4] ss:$8 sps:$4 sm:$0xff]  }
  0x77   :  { %1398 = vmatpush2.bf16.msra.mxu0 %v2202_v0  ;;  %v2293_v0 = vld [vmem:[%s3090_s1 + $0x5c0] ss:$8 sps:$4 sm:$0xff]  }
  0x78   :  { %1399 = vmatprep.subr.bf16.mxu0 %v2210_v1  ;;  %1439 = vmatpush2.bf16.msra.mxu1 %v2205_v2  ;;  %v2301_v1 = vld [vmem:[%s3090_s1 + $0x5b4] ss:$8 sps:$4 sm:$0xff]   ;;  %v2296_v2 = vld [vmem:[%s3090_s1 + $0x4b0] ss:$8 sps:$4 sm:$0xff]  }
  0x79   :  { %1440 = vmatprep.subr.bf16.mxu1 %v2213_v3  ;;  %v2304_v3 = vld [vmem:[%s3090_s1 + $0x4a4] ss:$8 sps:$4 sm:$0xff]  }
  0x7b   :  { %1400 = vmatpush2.bf16.msra.mxu0 %v2208_v4  ;;  %v2299_v4 = vld [vmem:[%s3090_s1 + $0x5b0] ss:$8 sps:$4 sm:$0xff]  }
  0x7c   :  { %1401 = vmatprep.subr.bf16.mxu0 %v2216_v5  ;;  %1441 = vmatpush2.bf16.msra.mxu1 %v2211_v6  ;;  %v2307_v5 = vld [vmem:[%s3090_s1 + $0x5a4] ss:$8 sps:$4 sm:$0xff]   ;;  %v2302_v6 = vld [vmem:[%s3090_s1 + $0x4a0] ss:$8 sps:$4 sm:$0xff]  }
  0x7d   :  { %1442 = vmatprep.subr.bf16.mxu1 %v2219_v7  ;;  %v2310_v7 = vld [vmem:[%s3090_s1 + $0x494] ss:$8 sps:$4 sm:$0xff]  }
  0x7f   :  { %1402 = vmatpush2.bf16.msra.mxu0 %v2214_v8  ;;  %v2305_v8 = vld [vmem:[%s3090_s1 + $0x5a0] ss:$8 sps:$4 sm:$0xff]  }
  0x80   :  { %1453 = vmatprep.subr.bf16.mxu0 %v2224_v9  ;;  %1443 = vmatpush2.bf16.msra.mxu1 %v2217_v10  ;;  %v2313_v9 = vld [vmem:[%s3090_s1 + $0x594] ss:$8 sps:$4 sm:$0xff]   ;;  %v2308_v10 = vld [vmem:[%s3090_s1 + $0x490] ss:$8 sps:$4 sm:$0xff]  }
  0x81   :  { %1494 = vmatprep.subr.bf16.mxu1 %v2229_v12  ;;  %v2311_v12 = vld [vmem:[%s3090_s1 + $0x590] ss:$8 sps:$4 sm:$0xff]  }
  0x82   :  { %1404 = vmatmul.mubr.bf16.vlgmr.msra.gmra.mxu0 %v1774_v11  ;;  %v2316_v11 = vld [vmem:[%s3090_s1 + $0x484] ss:$8 sps:$4 sm:$0xff]  }
  0x83   :  { %1454 = vmatpush1.bf16.msra.mxu0 %v2222_v13  ;;  %1445 = vmatmul.mubr.bf16.vlgmr.msra.gmra.mxu1 %v1776_v14  ;;  %v2319_v13 = vld [vmem:[%s3090_s1 + $0x584] ss:$8 sps:$4 sm:$0xff]   ;;  %v2314_v14 = vld [vmem:[%s3090_s1 + $0x480] ss:$8 sps:$4 sm:$0xff]  }
  0x84   :  { %1455 = vmatprep.subr.bf16.mxu0 %v2232_v15  ;;  %1495 = vmatpush1.bf16.msra.mxu1 %v2227_v16  ;;  %v2324_v15 = vld [vmem:[%s3090_s1 + $0x634] ss:$8 sps:$4 sm:$0xff]   ;;  %v2317_v16 = vld [vmem:[%s3090_s1 + $0x580] ss:$8 sps:$4 sm:$0xff]  }
  0x85   :  { %1485 = vmatprep.mubr.bf16.mxu0 %v1779_v20  ;;  %1496 = vmatprep.subr.bf16.mxu1 %v2235_v19  ;;  %v2322_v19 = vld [vmem:[%s3090_s1 + $0x630] ss:$8 sps:$4 sm:$0xff]   ;;  %v1780_v20 = vcombine.low %v2827_v21, %v2827_v21 }
  0x86   :  { %1526 = vmatprep.mubr.bf16.mxu1 %v1781_v23  ;;  %v2357_v23 = vmov 0   ;;  %v2330_v21 = vld [vmem:[%s3090_s1 + $0x610] ss:$8 sps:$4 sm:$0xff]  }
  0x87   :  { %1456 = vmatpush1.bf16.msra.mxu0 %v2230_v18  ;;  %v1778_v18 = vcombine.low %v2814_v17, %v2814_v17  ;;  %v2327_v17 = vld [vmem:[%s3090_s1 + $0x620] ss:$8 sps:$4 sm:$0xff]  }
  0x88   :  { %1457 = vmatprep.subr.bf16.mxu0 %v2238_v22  ;;  %1497 = vmatpush1.bf16.msra.mxu1 %v2233_v24  ;;  %v2329_v22 = vld [vmem:[%s3090_s1 + $0x624] ss:$8 sps:$4 sm:$0xff]   ;;  %v2332_v24 = vld [vmem:[%s3090_s1 + $0x614] ss:$8 sps:$4 sm:$0xff]  }
  0x89   :  { %1498 = vmatprep.subr.bf16.mxu1 %v2241_v25  ;;  %v2335_v25 = vld [vmem:[%s3090_s1 + $0x604] ss:$8 sps:$4 sm:$0xff]  }
  0x8b   :  { %1458 = vmatpush1.bf16.msra.mxu0 %v2236_v26  ;;  %v2333_v26 = vld [vmem:[%s3090_s1 + $0x600] ss:$8 sps:$4 sm:$0xff]  }
  0x8c   :  { %1459 = vmatprep.subr.bf16.mxu0 %v2244_v27  ;;  %1499 = vmatpush1.bf16.msra.mxu1 %v2239_v28  ;;  %v2337_v27 = vld [vmem:[%s3092_s3 + $0x78] sm:$0xff]   ;;  %v2336_v28 = vld [vmem:[%s3091_s0 + $0x30] ss:$0 sps:$4 sm:$0xff]  }
  0x8d   :  { %1500 = vmatprep.subr.bf16.mxu1 %v2247_v29  ;;  %v2338_v29 = vld [vmem:[%s3092_s3 + $0x38] sm:$0xff]  }
  0x8f   :  { %1460 = vmatpush1.bf16.msra.mxu0 %v2242_v30  ;;  %v2339_v30 = vld [vmem:[%s3092_s3 + $0x70] sm:$0xff]  }
  0x90   :  { %1461 = vmatprep.subr.bf16.mxu0 %v2250_v31  ;;  %1501 = vmatpush1.bf16.msra.mxu1 %v2245_v32  ;;  %v2340_v31 = vld [vmem:[%s3092_s3 + $0x30] sm:$0xff]   ;;  %v230_v32 = vlaneseq }
  0x91   :  { %1502 = vmatprep.subr.bf16.mxu1 %v2253_v33 }
  0x92   :  { %v231_v33 = vshrl.u32 %v230_v32, 7 }
  0x93   :  { %1462 = vmatpush1.bf16.msra.mxu0 %v2248_v34 }
  0x94   :  { %1463 = vmatprep.subr.bf16.mxu0 %v2256_v35  ;;  %1503 = vmatpush1.bf16.msra.mxu1 %v2251_v36  ;;  %v232_v34 = vsub.s32 0, %v231_v33  ;;  %v228_v35 = vld [vmem:[%s3093_s2] sm:$0x3]  ;;  %v236_v36 = vsub.s32 1, %v231_v33 }
  0x95   :  { %1504 = vmatprep.subr.bf16.mxu1 %v2259_v37 }
  0x96   :  { %v233_v37 = vrot.slane %v228_v35, %v232_v34 }
  0x97   :  { %1464 = vmatpush1.bf16.msra.mxu0 %v2254_v38  ;;  %v237_v38 = vrot.slane %v228_v35, %v236_v36  ;;  %v1984_v35 = vld [vmem:[%s3094_s4] ss:$0 sm:$0xff] }
  0x98   :  { %1465 = vmatprep.subr.bf16.mxu0 %v2262_v39  ;;  %1505 = vmatpush1.bf16.msra.mxu1 %v2257_v40  ;;  %v2341_v40 = vld [vmem:[%s3092_s3 + $0x68] sm:$0xff]  }
  0x99   :  { %1506 = vmatprep.subr.bf16.mxu1 %v2265_v41 }
  0x9b   :  { %1466 = vmatpush1.bf16.msra.mxu0 %v2260_v42  ;;  %v2342_v42 = vld [vmem:[%s3092_s3 + $0x28] sm:$0xff]  }
  0x9c   :  { %1467 = vmatprep.subr.bf16.mxu0 %v2268_v43  ;;  %1507 = vmatpush1.bf16.msra.mxu1 %v2263_v44 }
  0x9d   :  { %1508 = vmatprep.subr.bf16.mxu1 %v2271_v45 }
  0x9f   :  { %1468 = vmatpush1.bf16.msra.mxu0 %v2266_v46 }
  0xa0   :  { %1469 = vmatprep.subr.bf16.mxu0 %v2274_v47  ;;  %1509 = vmatpush1.bf16.msra.mxu1 %v2269_v48 }
  0xa1   :  { %1510 = vmatprep.subr.bf16.mxu1 %v2277_v49  ;;  %v2343_v49 = vld [vmem:[%s3092_s3 + $0x60] sm:$0xff]  }
  0xa3   :  { %1470 = vmatpush2.bf16.msra.mxu0 %v2272_v50 }
  0xa4   :  { %1471 = vmatprep.subr.bf16.mxu0 %v2280_v51  ;;  %1511 = vmatpush2.bf16.msra.mxu1 %v2275_v52  ;;  %v2344_v51 = vld [vmem:[%s3092_s3 + $0x20] sm:$0xff]  }
  0xa5   :  { %1512 = vmatprep.subr.bf16.mxu1 %v2283_v53 }
  0xa7   :  { %1472 = vmatpush2.bf16.msra.mxu0 %v2278_v54  ;;  %v2345_v54 = vld [vmem:[%s3092_s3 + $0x58] sm:$0xff]  }
  0xa8   :  { %1473 = vmatprep.subr.bf16.mxu0 %v2286_v55  ;;  %1513 = vmatpush2.bf16.msra.mxu1 %v2281_v56  ;;  %v2346_v55 = vld [vmem:[%s3092_s3 + $0x18] sm:$0xff]  }
  0xa9   :  { %1514 = vmatprep.subr.bf16.mxu1 %v2289_v57  ;;  %v2347_v57 = vld [vmem:[%s3092_s3 + $0x50] sm:$0xff]  }
  0xab   :  { %1474 = vmatpush2.bf16.msra.mxu0 %v2284_v58  ;;  %v2348_v58 = vld [vmem:[%s3092_s3 + $0x10] sm:$0xff]  }
  0xac   :  { %1475 = vmatprep.subr.bf16.mxu0 %v2292_v59  ;;  %1515 = vmatpush2.bf16.msra.mxu1 %v2287_v60  ;;  %v2349_v59 = vld [vmem:[%s3092_s3 + $0x48] sm:$0xff]  }
  0xad   :  { %1516 = vmatprep.subr.bf16.mxu1 %v2295_v61  ;;  %v2350_v60 = vld [vmem:[%s3092_s3 + $0x8] sm:$0xff]   ;;  %v2351_v61 = vld [vmem:[%s3092_s3 + $0x40] sm:$0xff]  }
  0xaf   :  { %1476 = vmatpush2.bf16.msra.mxu0 %v2290_v62  ;;  %v2352_v62 = vld [vmem:[%s3092_s3] sm:$0xff]  }
  0xb0   :  { %1477 = vmatprep.subr.bf16.mxu0 %v2298_v63  ;;  %1517 = vmatpush2.bf16.msra.mxu1 %v2293_v0 }
  0xb1   :  { %1518 = vmatprep.subr.bf16.mxu1 %v2301_v1 }
  0xb3   :  { %1478 = vmatpush2.bf16.msra.mxu0 %v2296_v2 }
  0xb4   :  { %1479 = vmatprep.subr.bf16.mxu0 %v2304_v3  ;;  %1519 = vmatpush2.bf16.msra.mxu1 %v2299_v4 }
  0xb5   :  { %1520 = vmatprep.subr.bf16.mxu1 %v2307_v5 }
  0xb7   :  { %1480 = vmatpush2.bf16.msra.mxu0 %v2302_v6 }
  0xb8   :  { %1481 = vmatprep.subr.bf16.mxu0 %v2310_v7  ;;  %1521 = vmatpush2.bf16.msra.mxu1 %v2305_v8 }
  0xb9   :  { %1522 = vmatprep.subr.bf16.mxu1 %v2313_v9 }
  0xbb   :  { %1482 = vmatpush2.bf16.msra.mxu0 %v2308_v10 }
  0xbc   :  { %1483 = vmatprep.subr.bf16.mxu0 %v2316_v11  ;;  %1523 = vmatpush2.bf16.msra.mxu1 %v2311_v12 }
  0xbd   :  { %1524 = vmatprep.subr.bf16.mxu1 %v2319_v13 }
  0xbf   :  { %1484 = vmatpush2.bf16.msra.mxu0 %v2314_v14 }
  0xc0   :  { %1543 = vmatprep.subr.bf16.mxu0 %v2324_v15  ;;  %1525 = vmatpush2.bf16.msra.mxu1 %v2317_v16 }
  0xc1   :  { %2001 = vmatprep.subr.bf16.mxu1 %v2337_v27 }
  0xc2   :  { %1486 = vmatmul.mubr.bf16.vlgmr.msra.gmra.mxu0 %v1778_v18 }
  0xc3   :  { %1544 = vmatpush1.bf16.msra.mxu0 %v2322_v19  ;;  %1567 = vmatprep.mubr.bf16.mxu0 %v2357_v23 }
  0xc4   :  { %1527 = vmatmul.mubr.bf16.vlgmr.msra.gmra.mxu1 %v1780_v20  ;;  %1545 = vmatprep.subr.bf16.mxu0 %v2329_v22 }
  0xc5   :  { %2002 = vmatpush3.bf16.msra.mxu1 %v2338_v29 }
  0xc6   :  { %2003 = vmatprep.subr.bf16.mxu1 %v2339_v30 }
  0xc7   :  { %1546 = vmatpush1.bf16.msra.mxu0 %v2327_v17 }
  0xc8   :  { %1547 = vmatprep.subr.bf16.mxu0 %v2332_v24 }
  0xc9   :  { %2004 = vmatpush3.bf16.msra.mxu1 %v2340_v31 }
  0xca   :  { %2005 = vmatprep.subr.bf16.mxu1 %v2341_v40 }
  0xcb   :  { %1548 = vmatpush1.bf16.msra.mxu0 %v2330_v21 }
  0xcc   :  { %1549 = vmatprep.subr.bf16.mxu0 %v2335_v25 }
  0xcd   :  { %2006 = vmatpush3.bf16.msra.mxu1 %v2342_v42 }
  0xce   :  { %2007 = vmatprep.subr.bf16.mxu1 %v2343_v49 }
  0xcf   :  { %1550 = vmatpush1.bf16.msra.mxu0 %v2333_v26 }
  0xd1   :  { %2008 = vmatpush3.bf16.msra.mxu1 %v2344_v51 }
  0xd2   :  { %1983 = vmatmul.mubr.msk.bf16.vlgmr.msra.gmra.mxu0 %vm1285_vm0, %v2336_v28  ;;  %2009 = vmatprep.subr.bf16.mxu1 %v2345_v54 }
  0xd5   :  { %2010 = vmatpush3.bf16.msra.mxu1 %v2346_v55 }
  0xd6   :  { %2011 = vmatprep.subr.bf16.mxu1 %v2347_v57 }
  0xd9   :  { %2012 = vmatpush3.bf16.msra.mxu1 %v2348_v58 }
  0xda   :  { %2013 = vmatprep.subr.bf16.mxu1 %v2349_v59 }
  0xdd   :  { %2014 = vmatpush3.bf16.msra.mxu1 %v2350_v60 }
  0xde   :  { %2015 = vmatprep.subr.bf16.mxu1 %v2351_v61 }
  0xe1   :  { %2016 = vmatpush3.bf16.msra.mxu1 %v2352_v62 }
 0x102   :  { %v1323_v39 = vpop.f32.mrf.mxu0 }
 0x103   :  { %v1324_v41 = vadd.f32 %v1323_v39, %v233_v37  ;;  %v1364_v44 = vpop.f32.mrf.mxu1 }
 0x104   :  { %v1325_v43 = vpop.f32.mrf.mxu0 }
 0x105   :  { %v1326_v45 = vadd.f32 %v1325_v43, %v237_v38  ;;  %v1365_v46 = vadd.f32 %v1364_v44, %v1324_v41  ;;  %v1366_v48 = vpop.f32.mrf.mxu1 }
 0x106   :  { %v1327_v47 = vpop.f32.mrf.mxu0 }
 0x107   :  { %v1367_v50 = vadd.f32 %v1366_v48, %v1326_v45  ;;  %v1368_v53 = vpop.f32.mrf.mxu1 }
 0x108   :  { %v1328_v52 = vpop.f32.mrf.mxu0 }
 0x109   :  { %v1369_v56 = vpop.f32.mrf.mxu1 }
 0x142   :  { %v1405_v63 = vpop.f32.mrf.mxu0 }
 0x143   :  { %v1406_v0 = vadd.f32 %v1405_v63, %v1365_v46  ;;  %v1446_v2 = vpop.f32.mrf.mxu1 }
 0x144   :  { %v1407_v1 = vpop.f32.mrf.mxu0 }
 0x145   :  { %v1408_v3 = vadd.f32 %v1407_v1, %v1367_v50  ;;  %v1447_v4 = vadd.f32 %v1446_v2, %v1406_v0  ;;  %v1448_v6 = vpop.f32.mrf.mxu1 }
 0x146   :  { %v1409_v5 = vpop.f32.mrf.mxu0 }
 0x147   :  { %v1449_v7 = vadd.f32 %v1448_v6, %v1408_v3  ;;  %v1450_v9 = vpop.f32.mrf.mxu1 }
 0x148   :  { %v1410_v8 = vpop.f32.mrf.mxu0 }
 0x149   :  { %v1451_v10 = vpop.f32.mrf.mxu1 }
 0x182   :  { %v1487_v11 = vpop.f32.mrf.mxu0 }
 0x183   :  { %v1488_v20 = vadd.f32 %v1487_v11, %v1447_v4 }
 0x184   :  { %v1489_v12 = vpop.f32.mrf.mxu0  ;;  %v1528_v13 = vpop.f32.mrf.mxu1 }
 0x185   :  { %v1490_v22 = vadd.f32 %v1489_v12, %v1449_v7  ;;  %v1529_v17 = vadd.f32 %v1528_v13, %v1488_v20 }
 0x186   :  { %v1491_v14 = vpop.f32.mrf.mxu0  ;;  %v1530_v15 = vpop.f32.mrf.mxu1 }
 0x187   :  { %v1531_v24 = vadd.f32 %v1530_v15, %v1490_v22 }
 0x188   :  { %v1492_v16 = vpop.f32.mrf.mxu0  ;;  %v1532_v18 = vpop.f32.mrf.mxu1 }
 0x18a   :  { %v1533_v19 = vpop.f32.mrf.mxu1 }
 0x192   :  { %v1569_v23 = vpop.f32.mrf.mxu0 }
 0x193   :  { %v1570_v21 = vadd.f32 %v1569_v23, %v1529_v17 }
 0x194   :  { %v1571_v25 = vpop.f32.mrf.mxu0 }
 0x195   :  { %v1572_v26 = vadd.f32 %v1571_v25, %v1531_v24  ;;  %v1576_v27 = vmax.f32 %v1570_v21, 0.0 }
 0x196   :  { %v1573_v28 = vpop.f32.mrf.mxu0 }
 0x197   :  { %v1577_v29 = vmax.f32 %v1572_v26, 0.0  ;;  %v1578_v32 = vpack.c.bf16 %v1576_v27, %v1576_v27 }
 0x198   :  { %v1574_v30 = vpop.f32.mrf.mxu0 }
 0x199   :  { %v1579_v31 = vpack.c.bf16 %v1577_v29, %v1577_v29 }
 0x19b   :  { %1747 = vmatprep.mubr.bf16.mxu1 %v1579_v31 }
 0x19c   :  { %1748 = vmatmul.mubr.bf16.vlgmr.msra.gmra.mxu1 %v1578_v32 }
 0x25c   :  { %v2017_v33 = vpop.f32.mrf.mxu1 }
 0x25e   :  { %v2018_v34 = vpop.f32.mrf.mxu1 }
 0x25f   :  { %v2019_v36 = vadd.f32 %v2018_v34, %v2017_v33 }
 0x260   :  { %v2020_v37 = vpop.f32.mrf.mxu1 }
 0x261   :  { %v1750_v38 = vadd.f32 %v2019_v36, %v1984_v35 }
 0x262   :  { %v2021_v39 = vpop.f32.mrf.mxu1 }
 0x263   :  { %1755 = vmax.xlane.f32.xlu0 %v1750_v38 }
 0x2ec   :  { %v1756_v40 = vpop.xlane.xlu0 %1755 }
 0x2ed   :  { %v1757_v41 = vsub.f32 %v1750_v38, %v1756_v40 }
 0x2ef   :  { %v1758_v42 = vmul.f32 1.442695, %v1757_v41 }
 0x2f1   :  { %2353 = vpow2.f32 %v1758_v42 }
 0x2fe   :  { %v2354_v43 = vpop.eup %2353 }
 0x2ff   :  { %1760 = vadd.xlane.f32.xlu0 %v2354_v43 }
 0x388   :  { %v1761_v44 = vpop.xlane.xlu0 %1760 }
 0x389   :  { %2355 = vrcp.f32 %v1761_v44 }
 0x396   :  { %v2356_v45 = vpop.eup %2355 }
 0x397   :  { %v1763_v46 = vmul.f32 %v2356_v45, %v2354_v43 }
 0x399   :  { %v1764_v47 = vpack.c.bf16 %v1763_v46, %v1763_v46 }
 0x39b   :  { %1765 = vst [vmem:[%s3095_s5] sm:$0xf] %v1764_v47 }

</bundles_post_ra>
